<compile_context>
chip_gen: v5e
topology: v5e:2x2
jax: 0.10.0
libtpu: 0.0.40
codegen_flags: <defaults>
</compile_context>

<pallas_src>
import functools

import jax
import jax.numpy as jnp
from jax.experimental import pallas as pl
from jax.experimental.pallas import tpu as pltpu


def _svd_purify_kernel(us_ref, v_ref, o_ref, *, tn, threshold, binaryzation):
    # us_ref: (tm, k)  = U * S   (singular values folded in the wrapper)
    # v_ref:  (k, Nc)  = V, fully resident in VMEM (fetched once for the grid)
    # o_ref:  (tm, tn) output tile (edge tiles are write-masked by Pallas)
    j = pl.program_id(1)
    start = pl.multiple_of(j * tn, 128)            # tn is a multiple of 128
    v_tile = v_ref[:, pl.ds(start, tn)]            # (k, tn) slice of resident V
    acc = jnp.dot(us_ref[...], v_tile,
                  preferred_element_type=jnp.float32)   # MXU: (tm,k)@(k,tn)
    if binaryzation and threshold is not None and threshold >= 0.0:
        # threshold + binarization collapse to a single compare -> {0, 1}
        o_ref[...] = jnp.where(acc > threshold, 1, 0).astype(o_ref.dtype)
    else:
        if threshold is not None:
            acc = jnp.where(acc <= threshold, 0.0, acc)   # adj[adj <= thr] = 0
        if binaryzation:
            acc = jnp.where(acc > 0.0, 1.0, acc)          # data[data > 0] = 1
        o_ref[...] = acc.astype(o_ref.dtype)


def _round_up(x, m):
    return ((x + m - 1) // m) * m


def _tpu_limits():
    """(physical per-core VMEM bytes, TensorCores per chip) with safe fallbacks."""
    vmem_cap = 64 << 20            # most conservative (v7x); v5e/v6e have 128 MiB
    n_cores = 1
    try:
        info = pltpu.get_tpu_info()
        vmem_cap = int(getattr(info, "vmem_capacity_bytes", vmem_cap))
        for attr in ("num_cores", "tensor_cores_per_chip", "num_tensorcores",
                     "core_count"):
            val = getattr(info, attr, None)
            if val:
                n_cores = int(val)
                break
    except Exception:
        pass
    return vmem_cap, n_cores


def svd_purification(adj, k=50, threshold=0.01, binaryzation=False,
                     tm=None, tn=None, out_dtype=None):
    """Dense analogue of SVDPurification.forward: the thresholded (optionally
    binarized) rank-k reconstruction of the adjacency matrix.

    out_dtype=None picks int8 for the binarized path with a non-negative
    threshold (values are exactly {0, 1}, so int8 is lossless and quarters the
    dominant N*N writeback), otherwise float32.
    """
    adj = adj.astype(jnp.float32)
    N = adj.shape[0]
    assert adj.shape == (N, N)

    if out_dtype is None:
        out_dtype = (jnp.int8 if (binaryzation and threshold is not None
                                  and threshold >= 0.0) else jnp.float32)
    out_itemsize = jnp.dtype(out_dtype).itemsize
    pack = max(8, 32 // out_itemsize)     # sublane pack: f32->8, bf16->16, i8->32

    # --- glue: truncated SVD factors (no Pallas equivalent for sparse svds) ---
    U, S, Vh = jnp.linalg.svd(adj, full_matrices=False)
    Uk = U[:, :k] * S[:k]                 # (N, k) with singular values folded in
    Vk = Vh[:k, :]                        # (k, N)

    vmem_cap, n_cores = _tpu_limits()

    # --- tile selection: output writeback dominates byte traffic, so use
    #     large, lane/sublane-dense tiles, clamped to (rounded-up) N.
    if tn is None:
        tn = min(2048, _round_up(N, 128))
    tn = _round_up(tn, 128)
    if tm is None:
        tm = min(512, _round_up(N, pack))
    tm = _round_up(tm, pack)
    # If the whole result fits in one tile, split rows so every TensorCore of a
    # multi-core chip (v7x) gets work; skip on single-core chips (v5e/v6e).
    if n_cores > 1 and pl.cdiv(N, tm) == 1 and pl.cdiv(N, tn) == 1 and N > pack:
        tm = max(pack, _round_up(pl.cdiv(N, n_cores), pack))

    grid = (pl.cdiv(N, tm), pl.cdiv(N, tn))
    Mr = grid[0] * tm                     # padded factor extents (inputs only)
    Nc = grid[1] * tn

    # Zero-pad only the tiny factors so input blocks never read out of bounds;
    # padded rows/cols reconstruct to values that land exclusively in output
    # positions Pallas masks out.  The output itself is emitted at exactly (N,N).
    if Mr != N:
        Uk = jnp.pad(Uk, ((0, Mr - N), (0, 0)))
    if Nc != N:
        Vk = jnp.pad(Vk, ((0, 0), (0, Nc - N)))

    # VMEM budget: double-buffered output + U*S tiles, resident V (counted x2
    # to be safe), plus headroom; clamp to 3/4 of physical per-core VMEM so the
    # limit is valid on v7x (64 MiB) as well as v5e/v6e (128 MiB).
    vmem_bytes = (2 * tm * tn * out_itemsize
                  + 2 * tm * k * 4
                  + 2 * k * Nc * 4)
    vmem_limit = int(min(max(vmem_bytes + (8 << 20), 16 << 20),
                         (vmem_cap * 3) // 4))

    kernel = functools.partial(_svd_purify_kernel, tn=tn,
                               threshold=threshold, binaryzation=binaryzation)

    out = pl.pallas_call(
        kernel,
        out_shape=jax.ShapeDtypeStruct((N, N), out_dtype),
        grid_spec=pltpu.PrefetchScalarGridSpec(
            num_scalar_prefetch=0,
            grid=grid,
            in_specs=[
                pl.BlockSpec((tm, k), lambda i, j: (i, 0)),   # (U*S) row tile
                pl.BlockSpec((k, Nc), lambda i, j: (0, 0)),   # V, VMEM-resident
            ],
            out_specs=pl.BlockSpec((tm, tn), lambda i, j: (i, j)),
        ),
        compiler_params=pltpu.CompilerParams(
            dimension_semantics=("parallel", "parallel"),
            vmem_limit_bytes=vmem_limit),
        cost_estimate=pl.CostEstimate(
            flops=2 * N * N * k,
            bytes_accessed=N * N * out_itemsize + 2 * N * k * 4,
            transcendentals=0),
    )(Uk, Vk)

    return out


def _check(out, adj, k, threshold, binaryzation, tol=1e-4):
    """Reference check tolerating f32-rounding flips of entries sitting exactly
    at the threshold."""
    U, S, Vh = jnp.linalg.svd(adj.astype(jnp.float32), full_matrices=False)
    recon = (U[:, :k] * S[:k]) @ Vh[:k, :]
    ref = recon
    if threshold is not None:
        ref = jnp.where(ref <= threshold, 0.0, ref)
    if binaryzation:
        ref = jnp.where(ref > 0.0, 1.0, ref)
    if threshold is not None:
        ambiguous = jnp.abs(recon - threshold) < 1e-3
    else:
        ambiguous = jnp.zeros_like(recon, dtype=bool)
    close = jnp.abs(out - ref) <= (tol + tol * jnp.abs(ref))
    assert bool(jnp.all(jnp.logical_or(close, ambiguous)))


if __name__ == "__main__":
    key = jax.random.PRNGKey(0)
    k = 50   # module default

    # N=256 (tile-aligned) and N=200 (exercises masked edge tiles / factor pad).
    for N in (256, 200):
        sub = jax.random.fold_in(key, N)
        raw = jax.random.uniform(sub, (N, N)) < 0.05
        adj = jnp.triu(raw.astype(jnp.float32), 1)
        adj = adj + adj.T   # symmetric 0/1 adjacency, zero diagonal

        # Weighted (thresholded) purification, f32 output.
        out = jax.block_until_ready(
            svd_purification(adj, k=k, threshold=0.01, binaryzation=False))
        assert out.shape == (N, N) and out.dtype == jnp.float32
        _check(out, adj, k, 0.01, False)

        # Binarized purification: auto int8 output (exactly lossless {0,1}).
        out_bin = jax.block_until_ready(
            svd_purification(adj, k=k, threshold=0.01, binaryzation=True))
        assert out_bin.shape == (N, N) and out_bin.dtype == jnp.int8
        _check(out_bin.astype(jnp.float32), adj, k, 0.01, True)

    print("KERNEL_OK")
</pallas_src>

<mosaic_0001>
module attributes {stable_mosaic.version = 11 : i64} {
  func.func @_svd_purify_kernel(%arg0: i32, %arg1: i32, %arg2: memref<256x50xf32, #tpu.memory_space<vmem>>, %arg3: memref<50x256xf32, #tpu.memory_space<vmem>>, %arg4: memref<256x256xf32, #tpu.memory_space<vmem>>) attributes {dimension_semantics = [#tpu.dimension_semantics<parallel>, #tpu.dimension_semantics<parallel>], iteration_bounds = array<i64: 1, 1>, scalar_prefetch = 0 : i64, scratch_operands = 0 : i64, tpu.core_type = #tpu.core_type<tc>, window_params = [{transform_indices = @transform_0, window_bounds = array<i64: 256, 50>}, {pipeline_mode = #tpu.pipeline_mode<synchronous>, transform_indices = @transform_1, window_bounds = array<i64: 50, 256>}, {transform_indices = @transform_2, window_bounds = array<i64: 256, 256>}]} {
    %c256_i32 = arith.constant 256 : i32
    %0 = arith.muli %arg1, %c256_i32 : i32
    %1 = tpu.assume_multiple %0, 128 : i32
    %c0 = arith.constant 0 : index
    %2 = arith.index_cast %1 : i32 to index
    %3 = vector.load %arg3[%c0, %2] : memref<50x256xf32, #tpu.memory_space<vmem>>, vector<50x256xf32>
    %c0_0 = arith.constant 0 : index
    %c0_1 = arith.constant 0 : index
    %4 = vector.load %arg2[%c0_0, %c0_1] : memref<256x50xf32, #tpu.memory_space<vmem>>, vector<256x50xf32>
    %cst = arith.constant dense<0.000000e+00> : vector<256x256xf32>
    %5 = tpu.matmul %4, %3, %cst {dimension_numbers = #tpu.dot_dimension_numbers<[1], [0], [0], [1], [0, 0, 1, 1], [], []>} : vector<256x50xf32>, vector<50x256xf32>, vector<256x256xf32> -> vector<256x256xf32>
    %cst_2 = arith.constant 0.00999999977 : f32
    %6 = vector.broadcast %cst_2 : f32 to vector<256x256xf32>
    %7 = arith.cmpf ole, %5, %6 : vector<256x256xf32>
    %cst_3 = arith.constant 0.000000e+00 : f32
    %8 = vector.broadcast %cst_3 : f32 to vector<256x256xf32>
    %9 = arith.select %7, %8, %5 : vector<256x256xi1>, vector<256x256xf32>
    %c0_4 = arith.constant 0 : index
    %c0_5 = arith.constant 0 : index
    %10 = vector.load %arg4[%c0_4, %c0_5] : memref<256x256xf32, #tpu.memory_space<vmem>>, vector<256x256xf32>
    tpu.vector_store %arg4[%c0_4, %c0_5], %9 {strides = array<i32>} : memref<256x256xf32, #tpu.memory_space<vmem>>, vector<256x256xf32>,
    return
  }
  func.func @transform_0(%arg0: i32, %arg1: i32) -> (i32, i32) {
    %c0_i32 = arith.constant 0 : i32
    %c0_i32_0 = arith.constant 0 : i32
    return %arg0, %c0_i32 : i32, i32
  }
  func.func @transform_1(%arg0: i32, %arg1: i32) -> (i32, i32) {
    %c0_i32 = arith.constant 0 : i32
    %c0_i32_0 = arith.constant 0 : i32
    %c0_i32_1 = arith.constant 0 : i32
    return %c0_i32, %c0_i32_0 : i32, i32
  }
  func.func @transform_2(%arg0: i32, %arg1: i32) -> (i32, i32) {
    %c0_i32 = arith.constant 0 : i32
    return %arg0, %arg1 : i32, i32
  }
}

</mosaic_0001>

<bundles_post_ra>
// kernel: tpu_custom_call.1
= control target key start
LH: loop header
LB: loop body
LE: loop exit
PB: predicated region body
PF: predicated region fallthrough
CT: control target
= control target key end

     0   :  { %vm160_vm0 = vcmask 1041408   ;;  %s937_s0 = inlined_call_operand.vmem [shape: f32[256,50], index: 0, kind: input, shape index: {}]   ;;  %s938_s1 = inlined_call_operand.vmem [shape: f32[50,256], index: 1, kind: input, shape index: {}]   ;;  %s939_s2 = inlined_call_operand.hbm [shape: f32[256,256], index: 2, kind: output, shape index: {}]  }
   0x1   :  { %v29_v0 = vld [vmem:[%s938_s1 + $0x60] sm:$0x3]  ;;  %v30_v1 = vld [vmem:[%s938_s1 + $0x68] sm:$0x3]  ;;  %v27_v2 = vld [vmem:[%s938_s1 + $0x50] sm:$0xff] }
   0x2   :  { %671 = vmatpush.msk.msra.mxu2 %vm160_vm0, %v29_v0  ;;  %678 = vmatpush.msk.msra.mxu3 %vm160_vm0, %v30_v1  ;;  %v28_v3 = vld [vmem:[%s938_s1 + $0x58] sm:$0xff]  ;;  %v25_v4 = vld [vmem:[%s938_s1 + $0x40] sm:$0xff]  ;;  %v26_v5 = vld [vmem:[%s938_s1 + $0x48] sm:$0xff] }
   0x3   :  { %605 = vmatpush.msk.msra.mxu0 %vm160_vm0, %v29_v0  ;;  %638 = vmatpush.msk.msra.mxu1 %vm160_vm0, %v30_v1  ;;  %v23_v6 = vld [vmem:[%s938_s1 + $0x30] sm:$0xff]  ;;  %v24_v7 = vld [vmem:[%s938_s1 + $0x38] sm:$0xff]  ;;  %v21_v8 = vld [vmem:[%s938_s1 + $0x20] sm:$0xff] }
   0x4   :  { %672 = vmatpush.msra.mxu2 %v27_v2  ;;  %679 = vmatpush.msra.mxu3 %v28_v3  ;;  %v22_v9 = vld [vmem:[%s938_s1 + $0x28] sm:$0xff] }
   0x5   :  { %177 = vmatpush.msra.mxu0 %v27_v2  ;;  %290 = vmatpush.msra.mxu1 %v28_v3 }
   0x6   :  { %673 = vmatpush.msra.mxu2 %v25_v4  ;;  %680 = vmatpush.msra.mxu3 %v26_v5 }
   0x7   :  { %178 = vmatpush.msra.mxu0 %v25_v4  ;;  %291 = vmatpush.msra.mxu1 %v26_v5 }
   0x8   :  { %674 = vmatpush.msra.mxu2 %v23_v6  ;;  %681 = vmatpush.msra.mxu3 %v24_v7 }
   0x9   :  { %7 = vsyncpa [#allocation3], 0  ;;  %v19_v10 = vld [vmem:[%s938_s1 + $0x10] sm:$0xff]  ;;  %v20_v11 = vld [vmem:[%s938_s1 + $0x18] sm:$0xff]  ;;  %179 = vmatpush.msra.mxu0 %v23_v6  ;;  %292 = vmatpush.msra.mxu1 %v24_v7  ;;  %vm63_vm1 = vcmask 408576   ;;  %s591_s17 = sshll.u32 %s939_s2, 4  ;;  %s592_s17 = int_to_ptr.hbm [resolvable:$true] %s591_s17 }
   0xa   :  { %675 = vmatpush.msra.mxu2 %v21_v8  ;;  %682 = vmatpush.msra.mxu3 %v22_v9  ;;  %v17_v12 = vld [vmem:[%s938_s1] sm:$0xff]  ;;  %v18_v13 = vld [vmem:[%s938_s1 + $0x8] sm:$0xff]  ;;  %v49_v18 = vld [vmem:[%s937_s0 + $0x90] sm:$0xff]  ;;  %s715_s18 = smov 256   ;;  %s716_s19 = smov 16  }
   0xb   :  { %180 = vmatpush.msra.mxu0 %v21_v8  ;;  %293 = vmatpush.msra.mxu1 %v22_v9  ;;  %v47_v14 = vld [vmem:[%s937_s0 + $0x80] sm:$0xff]  ;;  %v48_v16 = vld [vmem:[%s937_s0 + $0x88] sm:$0xff]  ;;  %v33_v19 = vld [vmem:[%s937_s0 + $0x10] sm:$0xff] }
   0xc   :  { %676 = vmatpush.msra.mxu2 %v19_v10  ;;  %683 = vmatpush.msra.mxu3 %v20_v11  ;;  %v31_v15 = vld [vmem:[%s937_s0] sm:$0xff]  ;;  %v32_v17 = vld [vmem:[%s937_s0 + $0x8] sm:$0xff]  ;;  %v50_v20 = vld [vmem:[%s937_s0 + $0x98] sm:$0xff] }
   0xd   :  { %181 = vmatpush.msra.mxu0 %v19_v10  ;;  %294 = vmatpush.msra.mxu1 %v20_v11  ;;  %v34_v21 = vld [vmem:[%s937_s0 + $0x18] sm:$0xff]  ;;  %v51_v22 = vld [vmem:[%s937_s0 + $0xa0] sm:$0xff]  ;;  %v52_v24 = vld [vmem:[%s937_s0 + $0xa8] sm:$0xff] }
   0xe   :  { %677 = vmatpush.msra.mxu2 %v17_v12  ;;  %684 = vmatpush.msra.mxu3 %v18_v13  ;;  %v35_v23 = vld [vmem:[%s937_s0 + $0x20] sm:$0xff]  ;;  %v36_v25 = vld [vmem:[%s937_s0 + $0x28] sm:$0xff]  ;;  %v53_v26 = vld [vmem:[%s937_s0 + $0xb0] sm:$0xff] }
   0xf   :  { %622 = vmatmul.msk.f32.vlgmr.msra.gmra.mxu2 %vm63_vm1, %v47_v14  ;;  %655 = vmatmul.msk.f32.vlgmr.msra.gmra.mxu3 %vm63_vm1, %v47_v14  ;;  %v37_v27 = vld [vmem:[%s937_s0 + $0x30] sm:$0xff]  ;;  %v54_v28 = vld [vmem:[%s937_s0 + $0xb8] sm:$0xff]  ;;  %v55_v30 = vld [vmem:[%s937_s0 + $0xc0] sm:$0xff] }
  0x10   :  { %182 = vmatpush.msra.mxu0 %v17_v12  ;;  %295 = vmatpush.msra.mxu1 %v18_v13  ;;  %v38_v29 = vld [vmem:[%s937_s0 + $0x38] sm:$0xff]  ;;  %v39_v31 = vld [vmem:[%s937_s0 + $0x40] sm:$0xff]  ;;  %v56_v32 = vld [vmem:[%s937_s0 + $0xc8] sm:$0xff] }
  0x11   :  { %606 = vmatmul.msk.f32.vlgmr.msra.gmra.mxu0 %vm63_vm1, %v31_v15  ;;  %639 = vmatmul.msk.f32.vlgmr.msra.gmra.mxu1 %vm63_vm1, %v31_v15  ;;  %v40_v33 = vld [vmem:[%s937_s0 + $0x48] sm:$0xff]  ;;  %v57_v34 = vld [vmem:[%s937_s0 + $0xd0] sm:$0xff]  ;;  %v58_v36 = vld [vmem:[%s937_s0 + $0xd8] sm:$0xff] }
  0x12   :  { %v41_v35 = vld [vmem:[%s937_s0 + $0x50] sm:$0xff]  ;;  %v42_v37 = vld [vmem:[%s937_s0 + $0x58] sm:$0xff]  ;;  %v59_v38 = vld [vmem:[%s937_s0 + $0xe0] sm:$0xff] }
  0x13   :  { %v43_v39 = vld [vmem:[%s937_s0 + $0x60] sm:$0xff]  ;;  %v60_v40 = vld [vmem:[%s937_s0 + $0xe8] sm:$0xff]  ;;  %v61_v42 = vld [vmem:[%s937_s0 + $0xf0] sm:$0xff] }
  0x14   :  { %v44_v41 = vld [vmem:[%s937_s0 + $0x68] sm:$0xff]  ;;  %v45_v43 = vld [vmem:[%s937_s0 + $0x70] sm:$0xff]  ;;  %v62_v44 = vld [vmem:[%s937_s0 + $0xf8] sm:$0xff] }
  0x15   :  { %v46_v45 = vld [vmem:[%s937_s0 + $0x78] sm:$0xff]  ;;  %s714_s0 = smov [#allocation2]  }
  0x16   :  { %s589_s14 = sshll.u32 %s714_s0, 4  ;;  %s590_s14 = int_to_ptr.vmem [resolvable:$true] %s589_s14 }
  0x17   :  { %623 = vmatmul.msk.f32.gmra.mxu2 %vm63_vm1, %v48_v16  ;;  %656 = vmatmul.msk.f32.gmra.mxu3 %vm63_vm1, %v48_v16 }
  0x19   :  { %607 = vmatmul.msk.f32.gmra.mxu0 %vm63_vm1, %v32_v17  ;;  %640 = vmatmul.msk.f32.gmra.mxu1 %vm63_vm1, %v32_v17 }
  0x1f   :  { %624 = vmatmul.msk.f32.gmra.mxu2 %vm63_vm1, %v49_v18  ;;  %657 = vmatmul.msk.f32.gmra.mxu3 %vm63_vm1, %v49_v18 }
  0x21   :  { %608 = vmatmul.msk.f32.gmra.mxu0 %vm63_vm1, %v33_v19  ;;  %641 = vmatmul.msk.f32.gmra.mxu1 %vm63_vm1, %v33_v19 }
  0x27   :  { %625 = vmatmul.msk.f32.gmra.mxu2 %vm63_vm1, %v50_v20  ;;  %658 = vmatmul.msk.f32.gmra.mxu3 %vm63_vm1, %v50_v20 }
  0x29   :  { %609 = vmatmul.msk.f32.gmra.mxu0 %vm63_vm1, %v34_v21  ;;  %642 = vmatmul.msk.f32.gmra.mxu1 %vm63_vm1, %v34_v21 }
  0x2f   :  { %626 = vmatmul.msk.f32.gmra.mxu2 %vm63_vm1, %v51_v22  ;;  %659 = vmatmul.msk.f32.gmra.mxu3 %vm63_vm1, %v51_v22 }
  0x31   :  { %610 = vmatmul.msk.f32.gmra.mxu0 %vm63_vm1, %v35_v23  ;;  %643 = vmatmul.msk.f32.gmra.mxu1 %vm63_vm1, %v35_v23 }
  0x37   :  { %627 = vmatmul.msk.f32.gmra.mxu2 %vm63_vm1, %v52_v24  ;;  %660 = vmatmul.msk.f32.gmra.mxu3 %vm63_vm1, %v52_v24 }
  0x39   :  { %611 = vmatmul.msk.f32.gmra.mxu0 %vm63_vm1, %v36_v25  ;;  %644 = vmatmul.msk.f32.gmra.mxu1 %vm63_vm1, %v36_v25 }
  0x3f   :  { %628 = vmatmul.msk.f32.gmra.mxu2 %vm63_vm1, %v53_v26  ;;  %661 = vmatmul.msk.f32.gmra.mxu3 %vm63_vm1, %v53_v26 }
  0x41   :  { %612 = vmatmul.msk.f32.gmra.mxu0 %vm63_vm1, %v37_v27  ;;  %645 = vmatmul.msk.f32.gmra.mxu1 %vm63_vm1, %v37_v27 }
  0x47   :  { %629 = vmatmul.msk.f32.gmra.mxu2 %vm63_vm1, %v54_v28  ;;  %662 = vmatmul.msk.f32.gmra.mxu3 %vm63_vm1, %v54_v28 }
  0x49   :  { %613 = vmatmul.msk.f32.gmra.mxu0 %vm63_vm1, %v38_v29  ;;  %646 = vmatmul.msk.f32.gmra.mxu1 %vm63_vm1, %v38_v29 }
  0x4f   :  { %630 = vmatmul.msk.f32.gmra.mxu2 %vm63_vm1, %v55_v30  ;;  %663 = vmatmul.msk.f32.gmra.mxu3 %vm63_vm1, %v55_v30 }
  0x51   :  { %614 = vmatmul.msk.f32.gmra.mxu0 %vm63_vm1, %v39_v31  ;;  %647 = vmatmul.msk.f32.gmra.mxu1 %vm63_vm1, %v39_v31 }
  0x57   :  { %631 = vmatmul.msk.f32.gmra.mxu2 %vm63_vm1, %v56_v32  ;;  %664 = vmatmul.msk.f32.gmra.mxu3 %vm63_vm1, %v56_v32 }
  0x59   :  { %615 = vmatmul.msk.f32.gmra.mxu0 %vm63_vm1, %v40_v33  ;;  %648 = vmatmul.msk.f32.gmra.mxu1 %vm63_vm1, %v40_v33 }
  0x5f   :  { %632 = vmatmul.msk.f32.gmra.mxu2 %vm63_vm1, %v57_v34  ;;  %665 = vmatmul.msk.f32.gmra.mxu3 %vm63_vm1, %v57_v34 }
  0x61   :  { %616 = vmatmul.msk.f32.gmra.mxu0 %vm63_vm1, %v41_v35  ;;  %649 = vmatmul.msk.f32.gmra.mxu1 %vm63_vm1, %v41_v35 }
  0x67   :  { %633 = vmatmul.msk.f32.gmra.mxu2 %vm63_vm1, %v58_v36  ;;  %666 = vmatmul.msk.f32.gmra.mxu3 %vm63_vm1, %v58_v36 }
  0x69   :  { %617 = vmatmul.msk.f32.gmra.mxu0 %vm63_vm1, %v42_v37  ;;  %650 = vmatmul.msk.f32.gmra.mxu1 %vm63_vm1, %v42_v37 }
  0x6f   :  { %634 = vmatmul.msk.f32.gmra.mxu2 %vm63_vm1, %v59_v38  ;;  %667 = vmatmul.msk.f32.gmra.mxu3 %vm63_vm1, %v59_v38 }
  0x71   :  { %618 = vmatmul.msk.f32.gmra.mxu0 %vm63_vm1, %v43_v39  ;;  %651 = vmatmul.msk.f32.gmra.mxu1 %vm63_vm1, %v43_v39 }
  0x77   :  { %635 = vmatmul.msk.f32.gmra.mxu2 %vm63_vm1, %v60_v40  ;;  %668 = vmatmul.msk.f32.gmra.mxu3 %vm63_vm1, %v60_v40 }
  0x79   :  { %619 = vmatmul.msk.f32.gmra.mxu0 %vm63_vm1, %v44_v41  ;;  %652 = vmatmul.msk.f32.gmra.mxu1 %vm63_vm1, %v44_v41 }
  0x7f   :  { %636 = vmatmul.msk.f32.gmra.mxu2 %vm63_vm1, %v61_v42  ;;  %669 = vmatmul.msk.f32.gmra.mxu3 %vm63_vm1, %v61_v42 }
  0x81   :  { %620 = vmatmul.msk.f32.gmra.mxu0 %vm63_vm1, %v45_v43  ;;  %653 = vmatmul.msk.f32.gmra.mxu1 %vm63_vm1, %v45_v43 }
  0x87   :  { %637 = vmatmul.msk.f32.gmra.mxu2 %vm63_vm1, %v62_v44  ;;  %670 = vmatmul.msk.f32.gmra.mxu3 %vm63_vm1, %v62_v44 }
  0x89   :  { %621 = vmatmul.msk.f32.gmra.mxu0 %vm63_vm1, %v46_v45  ;;  %654 = vmatmul.msk.f32.gmra.mxu1 %vm63_vm1, %v46_v45 }
  0x8e   :  { %v184_v46 = vpop.f32.mrf.mxu0  ;;  %v297_v47 = vpop.f32.mrf.mxu1 }
  0x8f   :  { %vm393_vm2 = vcmp.le.f32.partialorder %v184_v46, 0.01  ;;  %vm394_vm3 = vcmp.le.f32.partialorder %v297_v47, 0.01 }
  0x90   :  { %v457_v48 = vsel %vm393_vm2, 0.0, %v184_v46  ;;  %v458_v49 = vsel %vm394_vm3, 0.0, %v297_v47 }
  0x91   :  { %521 = vst [vmem:[#allocation2] sm:$0xff] %v457_v48 }
  0x92   :  { %522 = vst [vmem:[#allocation2 + $0x8] sm:$0xff] %v458_v49  ;;  %v232_v50 = vpop.f32.mrf.mxu2  ;;  %v345_v51 = vpop.f32.mrf.mxu3 }
  0x93   :  { %vm425_vm4 = vcmp.le.f32.partialorder %v232_v50, 0.01  ;;  %vm426_vm5 = vcmp.le.f32.partialorder %v345_v51, 0.01 }
  0x94   :  { %v489_v52 = vsel %vm425_vm4, 0.0, %v232_v50  ;;  %v490_v53 = vsel %vm426_vm5, 0.0, %v345_v51 }
  0x95   :  { %553 = vst [vmem:[#allocation2 + $0x100] sm:$0xff] %v489_v52 }
  0x96   :  { %554 = vst [vmem:[#allocation2 + $0x108] sm:$0xff] %v490_v53  ;;  %v187_v54 = vpop.f32.mrf.mxu0  ;;  %v300_v55 = vpop.f32.mrf.mxu1 }
  0x97   :  { %vm395_vm6 = vcmp.le.f32.partialorder %v187_v54, 0.01  ;;  %vm396_vm7 = vcmp.le.f32.partialorder %v300_v55, 0.01 }
  0x98   :  { %v459_v56 = vsel %vm395_vm6, 0.0, %v187_v54  ;;  %v460_v57 = vsel %vm396_vm7, 0.0, %v300_v55 }
  0x99   :  { %523 = vst [vmem:[#allocation2 + $0x10] sm:$0xff] %v459_v56 }
  0x9a   :  { %524 = vst [vmem:[#allocation2 + $0x18] sm:$0xff] %v460_v57  ;;  %v235_v58 = vpop.f32.mrf.mxu2  ;;  %v348_v59 = vpop.f32.mrf.mxu3 }
  0x9b   :  { %vm427_vm8 = vcmp.le.f32.partialorder %v235_v58, 0.01  ;;  %vm428_vm9 = vcmp.le.f32.partialorder %v348_v59, 0.01 }
  0x9c   :  { %v491_v60 = vsel %vm427_vm8, 0.0, %v235_v58  ;;  %v492_v61 = vsel %vm428_vm9, 0.0, %v348_v59 }
  0x9d   :  { %555 = vst [vmem:[#allocation2 + $0x110] sm:$0xff] %v491_v60 }
  0x9e   :  { %556 = vst [vmem:[#allocation2 + $0x118] sm:$0xff] %v492_v61  ;;  %v190_v62 = vpop.f32.mrf.mxu0  ;;  %v303_v63 = vpop.f32.mrf.mxu1 }
  0x9f   :  { %vm397_vm10 = vcmp.le.f32.partialorder %v190_v62, 0.01  ;;  %vm398_vm11 = vcmp.le.f32.partialorder %v303_v63, 0.01 }
  0xa0   :  { %v461_v0 = vsel %vm397_vm10, 0.0, %v190_v62  ;;  %v462_v1 = vsel %vm398_vm11, 0.0, %v303_v63 }
  0xa1   :  { %525 = vst [vmem:[#allocation2 + $0x20] sm:$0xff] %v461_v0 }
  0xa2   :  { %526 = vst [vmem:[#allocation2 + $0x28] sm:$0xff] %v462_v1  ;;  %v238_v2 = vpop.f32.mrf.mxu2  ;;  %v351_v3 = vpop.f32.mrf.mxu3 }
  0xa3   :  { %vm429_vm12 = vcmp.le.f32.partialorder %v238_v2, 0.01  ;;  %vm430_vm13 = vcmp.le.f32.partialorder %v351_v3, 0.01 }
  0xa4   :  { %v493_v4 = vsel %vm429_vm12, 0.0, %v238_v2  ;;  %v494_v5 = vsel %vm430_vm13, 0.0, %v351_v3 }
  0xa5   :  { %557 = vst [vmem:[#allocation2 + $0x120] sm:$0xff] %v493_v4 }
  0xa6   :  { %558 = vst [vmem:[#allocation2 + $0x128] sm:$0xff] %v494_v5  ;;  %v193_v6 = vpop.f32.mrf.mxu0  ;;  %v306_v7 = vpop.f32.mrf.mxu1 }
  0xa7   :  { %vm399_vm14 = vcmp.le.f32.partialorder %v193_v6, 0.01  ;;  %vm400_vm15 = vcmp.le.f32.partialorder %v306_v7, 0.01 }
  0xa8   :  { %v463_v8 = vsel %vm399_vm14, 0.0, %v193_v6  ;;  %v464_v9 = vsel %vm400_vm15, 0.0, %v306_v7 }
  0xa9   :  { %527 = vst [vmem:[#allocation2 + $0x30] sm:$0xff] %v463_v8 }
  0xaa   :  { %528 = vst [vmem:[#allocation2 + $0x38] sm:$0xff] %v464_v9  ;;  %v241_v10 = vpop.f32.mrf.mxu2  ;;  %v354_v11 = vpop.f32.mrf.mxu3 }
  0xab   :  { %vm431_vm0 = vcmp.le.f32.partialorder %v241_v10, 0.01  ;;  %vm432_vm1 = vcmp.le.f32.partialorder %v354_v11, 0.01 }
  0xac   :  { %v495_v12 = vsel %vm431_vm0, 0.0, %v241_v10  ;;  %v496_v13 = vsel %vm432_vm1, 0.0, %v354_v11 }
  0xad   :  { %559 = vst [vmem:[#allocation2 + $0x130] sm:$0xff] %v495_v12 }
  0xae   :  { %560 = vst [vmem:[#allocation2 + $0x138] sm:$0xff] %v496_v13  ;;  %v196_v14 = vpop.f32.mrf.mxu0  ;;  %v309_v15 = vpop.f32.mrf.mxu1 }
  0xaf   :  { %vm401_vm2 = vcmp.le.f32.partialorder %v196_v14, 0.01  ;;  %vm402_vm3 = vcmp.le.f32.partialorder %v309_v15, 0.01 }
  0xb0   :  { %v465_v16 = vsel %vm401_vm2, 0.0, %v196_v14  ;;  %v466_v17 = vsel %vm402_vm3, 0.0, %v309_v15 }
  0xb1   :  { %529 = vst [vmem:[#allocation2 + $0x40] sm:$0xff] %v465_v16 }
  0xb2   :  { %530 = vst [vmem:[#allocation2 + $0x48] sm:$0xff] %v466_v17  ;;  %v244_v18 = vpop.f32.mrf.mxu2  ;;  %v357_v19 = vpop.f32.mrf.mxu3 }
  0xb3   :  { %vm433_vm4 = vcmp.le.f32.partialorder %v244_v18, 0.01  ;;  %vm434_vm5 = vcmp.le.f32.partialorder %v357_v19, 0.01 }
  0xb4   :  { %v497_v20 = vsel %vm433_vm4, 0.0, %v244_v18  ;;  %v498_v21 = vsel %vm434_vm5, 0.0, %v357_v19 }
  0xb5   :  { %561 = vst [vmem:[#allocation2 + $0x140] sm:$0xff] %v497_v20 }
  0xb6   :  { %562 = vst [vmem:[#allocation2 + $0x148] sm:$0xff] %v498_v21  ;;  %v199_v22 = vpop.f32.mrf.mxu0  ;;  %v312_v23 = vpop.f32.mrf.mxu1 }
  0xb7   :  { %vm403_vm6 = vcmp.le.f32.partialorder %v199_v22, 0.01  ;;  %vm404_vm7 = vcmp.le.f32.partialorder %v312_v23, 0.01 }
  0xb8   :  { %v467_v24 = vsel %vm403_vm6, 0.0, %v199_v22  ;;  %v468_v25 = vsel %vm404_vm7, 0.0, %v312_v23 }
  0xb9   :  { %531 = vst [vmem:[#allocation2 + $0x50] sm:$0xff] %v467_v24 }
  0xba   :  { %532 = vst [vmem:[#allocation2 + $0x58] sm:$0xff] %v468_v25  ;;  %v247_v26 = vpop.f32.mrf.mxu2  ;;  %v360_v27 = vpop.f32.mrf.mxu3 }
  0xbb   :  { %vm435_vm8 = vcmp.le.f32.partialorder %v247_v26, 0.01  ;;  %vm436_vm9 = vcmp.le.f32.partialorder %v360_v27, 0.01 }
  0xbc   :  { %v499_v28 = vsel %vm435_vm8, 0.0, %v247_v26  ;;  %v500_v29 = vsel %vm436_vm9, 0.0, %v360_v27 }
  0xbd   :  { %563 = vst [vmem:[#allocation2 + $0x150] sm:$0xff] %v499_v28 }
  0xbe   :  { %564 = vst [vmem:[#allocation2 + $0x158] sm:$0xff] %v500_v29  ;;  %v202_v30 = vpop.f32.mrf.mxu0  ;;  %v315_v31 = vpop.f32.mrf.mxu1 }
  0xbf   :  { %vm405_vm10 = vcmp.le.f32.partialorder %v202_v30, 0.01  ;;  %vm406_vm11 = vcmp.le.f32.partialorder %v315_v31, 0.01 }
  0xc0   :  { %v469_v32 = vsel %vm405_vm10, 0.0, %v202_v30  ;;  %v470_v33 = vsel %vm406_vm11, 0.0, %v315_v31 }
  0xc1   :  { %533 = vst [vmem:[#allocation2 + $0x60] sm:$0xff] %v469_v32 }
  0xc2   :  { %534 = vst [vmem:[#allocation2 + $0x68] sm:$0xff] %v470_v33  ;;  %v250_v34 = vpop.f32.mrf.mxu2  ;;  %v363_v35 = vpop.f32.mrf.mxu3 }
  0xc3   :  { %vm437_vm12 = vcmp.le.f32.partialorder %v250_v34, 0.01  ;;  %vm438_vm13 = vcmp.le.f32.partialorder %v363_v35, 0.01 }
  0xc4   :  { %v501_v36 = vsel %vm437_vm12, 0.0, %v250_v34  ;;  %v502_v37 = vsel %vm438_vm13, 0.0, %v363_v35 }
  0xc5   :  { %565 = vst [vmem:[#allocation2 + $0x160] sm:$0xff] %v501_v36 }
  0xc6   :  { %566 = vst [vmem:[#allocation2 + $0x168] sm:$0xff] %v502_v37  ;;  %v205_v38 = vpop.f32.mrf.mxu0  ;;  %v318_v39 = vpop.f32.mrf.mxu1 }
  0xc7   :  { %vm407_vm14 = vcmp.le.f32.partialorder %v205_v38, 0.01  ;;  %vm408_vm15 = vcmp.le.f32.partialorder %v318_v39, 0.01 }
  0xc8   :  { %v471_v40 = vsel %vm407_vm14, 0.0, %v205_v38  ;;  %v472_v41 = vsel %vm408_vm15, 0.0, %v318_v39 }
  0xc9   :  { %535 = vst [vmem:[#allocation2 + $0x70] sm:$0xff] %v471_v40 }
  0xca   :  { %536 = vst [vmem:[#allocation2 + $0x78] sm:$0xff] %v472_v41  ;;  %v253_v42 = vpop.f32.mrf.mxu2  ;;  %v366_v43 = vpop.f32.mrf.mxu3 }
  0xcb   :  { %vm439_vm0 = vcmp.le.f32.partialorder %v253_v42, 0.01  ;;  %vm440_vm1 = vcmp.le.f32.partialorder %v366_v43, 0.01 }
  0xcc   :  { %v503_v44 = vsel %vm439_vm0, 0.0, %v253_v42  ;;  %v504_v45 = vsel %vm440_vm1, 0.0, %v366_v43 }
  0xcd   :  { %567 = vst [vmem:[#allocation2 + $0x170] sm:$0xff] %v503_v44 }
  0xce   :  { %568 = vst [vmem:[#allocation2 + $0x178] sm:$0xff] %v504_v45  ;;  %v208_v46 = vpop.f32.mrf.mxu0  ;;  %v321_v47 = vpop.f32.mrf.mxu1 }
  0xcf   :  { %vm409_vm2 = vcmp.le.f32.partialorder %v208_v46, 0.01  ;;  %vm410_vm3 = vcmp.le.f32.partialorder %v321_v47, 0.01 }
  0xd0   :  { %v473_v48 = vsel %vm409_vm2, 0.0, %v208_v46  ;;  %v474_v49 = vsel %vm410_vm3, 0.0, %v321_v47 }
  0xd1   :  { %537 = vst [vmem:[#allocation2 + $0x80] sm:$0xff] %v473_v48 }
  0xd2   :  { %538 = vst [vmem:[#allocation2 + $0x88] sm:$0xff] %v474_v49  ;;  %v256_v50 = vpop.f32.mrf.mxu2  ;;  %v369_v51 = vpop.f32.mrf.mxu3 }
  0xd3   :  { %vm441_vm4 = vcmp.le.f32.partialorder %v256_v50, 0.01  ;;  %vm442_vm5 = vcmp.le.f32.partialorder %v369_v51, 0.01 }
  0xd4   :  { %v505_v52 = vsel %vm441_vm4, 0.0, %v256_v50  ;;  %v506_v53 = vsel %vm442_vm5, 0.0, %v369_v51 }
  0xd5   :  { %569 = vst [vmem:[#allocation2 + $0x180] sm:$0xff] %v505_v52 }
  0xd6   :  { %570 = vst [vmem:[#allocation2 + $0x188] sm:$0xff] %v506_v53  ;;  %v211_v54 = vpop.f32.mrf.mxu0  ;;  %v324_v55 = vpop.f32.mrf.mxu1 }
  0xd7   :  { %vm411_vm6 = vcmp.le.f32.partialorder %v211_v54, 0.01  ;;  %vm412_vm7 = vcmp.le.f32.partialorder %v324_v55, 0.01 }
  0xd8   :  { %v475_v56 = vsel %vm411_vm6, 0.0, %v211_v54  ;;  %v476_v57 = vsel %vm412_vm7, 0.0, %v324_v55 }
  0xd9   :  { %539 = vst [vmem:[#allocation2 + $0x90] sm:$0xff] %v475_v56 }
  0xda   :  { %540 = vst [vmem:[#allocation2 + $0x98] sm:$0xff] %v476_v57  ;;  %v259_v58 = vpop.f32.mrf.mxu2  ;;  %v372_v59 = vpop.f32.mrf.mxu3 }
  0xdb   :  { %vm443_vm8 = vcmp.le.f32.partialorder %v259_v58, 0.01  ;;  %vm444_vm9 = vcmp.le.f32.partialorder %v372_v59, 0.01 }
  0xdc   :  { %v507_v60 = vsel %vm443_vm8, 0.0, %v259_v58  ;;  %v508_v61 = vsel %vm444_vm9, 0.0, %v372_v59 }
  0xdd   :  { %571 = vst [vmem:[#allocation2 + $0x190] sm:$0xff] %v507_v60 }
  0xde   :  { %572 = vst [vmem:[#allocation2 + $0x198] sm:$0xff] %v508_v61  ;;  %v214_v62 = vpop.f32.mrf.mxu0  ;;  %v327_v63 = vpop.f32.mrf.mxu1 }
  0xdf   :  { %vm413_vm10 = vcmp.le.f32.partialorder %v214_v62, 0.01  ;;  %vm414_vm11 = vcmp.le.f32.partialorder %v327_v63, 0.01 }
  0xe0   :  { %v477_v0 = vsel %vm413_vm10, 0.0, %v214_v62  ;;  %v478_v1 = vsel %vm414_vm11, 0.0, %v327_v63 }
  0xe1   :  { %541 = vst [vmem:[#allocation2 + $0xa0] sm:$0xff] %v477_v0 }
  0xe2   :  { %542 = vst [vmem:[#allocation2 + $0xa8] sm:$0xff] %v478_v1  ;;  %v262_v2 = vpop.f32.mrf.mxu2  ;;  %v375_v3 = vpop.f32.mrf.mxu3 }
  0xe3   :  { %vm445_vm12 = vcmp.le.f32.partialorder %v262_v2, 0.01  ;;  %vm446_vm13 = vcmp.le.f32.partialorder %v375_v3, 0.01 }
  0xe4   :  { %v509_v4 = vsel %vm445_vm12, 0.0, %v262_v2  ;;  %v510_v5 = vsel %vm446_vm13, 0.0, %v375_v3 }
  0xe5   :  { %573 = vst [vmem:[#allocation2 + $0x1a0] sm:$0xff] %v509_v4 }
  0xe6   :  { %574 = vst [vmem:[#allocation2 + $0x1a8] sm:$0xff] %v510_v5  ;;  %v217_v6 = vpop.f32.mrf.mxu0  ;;  %v330_v7 = vpop.f32.mrf.mxu1 }
  0xe7   :  { %vm415_vm14 = vcmp.le.f32.partialorder %v217_v6, 0.01  ;;  %vm416_vm15 = vcmp.le.f32.partialorder %v330_v7, 0.01 }
  0xe8   :  { %v479_v8 = vsel %vm415_vm14, 0.0, %v217_v6  ;;  %v480_v9 = vsel %vm416_vm15, 0.0, %v330_v7 }
  0xe9   :  { %543 = vst [vmem:[#allocation2 + $0xb0] sm:$0xff] %v479_v8 }
  0xea   :  { %544 = vst [vmem:[#allocation2 + $0xb8] sm:$0xff] %v480_v9  ;;  %v265_v10 = vpop.f32.mrf.mxu2  ;;  %v378_v11 = vpop.f32.mrf.mxu3 }
  0xeb   :  { %vm447_vm0 = vcmp.le.f32.partialorder %v265_v10, 0.01  ;;  %vm448_vm1 = vcmp.le.f32.partialorder %v378_v11, 0.01 }
  0xec   :  { %v511_v12 = vsel %vm447_vm0, 0.0, %v265_v10  ;;  %v512_v13 = vsel %vm448_vm1, 0.0, %v378_v11 }
  0xed   :  { %575 = vst [vmem:[#allocation2 + $0x1b0] sm:$0xff] %v511_v12 }
  0xee   :  { %576 = vst [vmem:[#allocation2 + $0x1b8] sm:$0xff] %v512_v13  ;;  %v220_v14 = vpop.f32.mrf.mxu0  ;;  %v333_v15 = vpop.f32.mrf.mxu1 }
  0xef   :  { %vm417_vm2 = vcmp.le.f32.partialorder %v220_v14, 0.01  ;;  %vm418_vm3 = vcmp.le.f32.partialorder %v333_v15, 0.01 }
  0xf0   :  { %v481_v16 = vsel %vm417_vm2, 0.0, %v220_v14  ;;  %v482_v17 = vsel %vm418_vm3, 0.0, %v333_v15 }
  0xf1   :  { %545 = vst [vmem:[#allocation2 + $0xc0] sm:$0xff] %v481_v16 }
  0xf2   :  { %546 = vst [vmem:[#allocation2 + $0xc8] sm:$0xff] %v482_v17  ;;  %v268_v18 = vpop.f32.mrf.mxu2  ;;  %v381_v19 = vpop.f32.mrf.mxu3 }
  0xf3   :  { %vm449_vm4 = vcmp.le.f32.partialorder %v268_v18, 0.01  ;;  %vm450_vm5 = vcmp.le.f32.partialorder %v381_v19, 0.01 }
  0xf4   :  { %v513_v20 = vsel %vm449_vm4, 0.0, %v268_v18  ;;  %v514_v21 = vsel %vm450_vm5, 0.0, %v381_v19 }
  0xf5   :  { %577 = vst [vmem:[#allocation2 + $0x1c0] sm:$0xff] %v513_v20 }
  0xf6   :  { %578 = vst [vmem:[#allocation2 + $0x1c8] sm:$0xff] %v514_v21  ;;  %v223_v22 = vpop.f32.mrf.mxu0  ;;  %v336_v23 = vpop.f32.mrf.mxu1 }
  0xf7   :  { %vm419_vm6 = vcmp.le.f32.partialorder %v223_v22, 0.01  ;;  %vm420_vm7 = vcmp.le.f32.partialorder %v336_v23, 0.01 }
  0xf8   :  { %v483_v24 = vsel %vm419_vm6, 0.0, %v223_v22  ;;  %v484_v25 = vsel %vm420_vm7, 0.0, %v336_v23 }
  0xf9   :  { %547 = vst [vmem:[#allocation2 + $0xd0] sm:$0xff] %v483_v24 }
  0xfa   :  { %548 = vst [vmem:[#allocation2 + $0xd8] sm:$0xff] %v484_v25  ;;  %v271_v26 = vpop.f32.mrf.mxu2  ;;  %v384_v27 = vpop.f32.mrf.mxu3 }
  0xfb   :  { %vm451_vm8 = vcmp.le.f32.partialorder %v271_v26, 0.01  ;;  %vm452_vm9 = vcmp.le.f32.partialorder %v384_v27, 0.01 }
  0xfc   :  { %v515_v28 = vsel %vm451_vm8, 0.0, %v271_v26  ;;  %v516_v29 = vsel %vm452_vm9, 0.0, %v384_v27 }
  0xfd   :  { %579 = vst [vmem:[#allocation2 + $0x1d0] sm:$0xff] %v515_v28 }
  0xfe   :  { %580 = vst [vmem:[#allocation2 + $0x1d8] sm:$0xff] %v516_v29  ;;  %v226_v30 = vpop.f32.mrf.mxu0  ;;  %v339_v31 = vpop.f32.mrf.mxu1 }
  0xff   :  { %vm421_vm10 = vcmp.le.f32.partialorder %v226_v30, 0.01  ;;  %vm422_vm11 = vcmp.le.f32.partialorder %v339_v31, 0.01 }
 0x100   :  { %v485_v32 = vsel %vm421_vm10, 0.0, %v226_v30  ;;  %v486_v33 = vsel %vm422_vm11, 0.0, %v339_v31 }
 0x101   :  { %549 = vst [vmem:[#allocation2 + $0xe0] sm:$0xff] %v485_v32 }
 0x102   :  { %550 = vst [vmem:[#allocation2 + $0xe8] sm:$0xff] %v486_v33  ;;  %v274_v34 = vpop.f32.mrf.mxu2  ;;  %v387_v35 = vpop.f32.mrf.mxu3 }
 0x103   :  { %vm453_vm12 = vcmp.le.f32.partialorder %v274_v34, 0.01  ;;  %vm454_vm13 = vcmp.le.f32.partialorder %v387_v35, 0.01 }
 0x104   :  { %v517_v36 = vsel %vm453_vm12, 0.0, %v274_v34  ;;  %v518_v37 = vsel %vm454_vm13, 0.0, %v387_v35 }
 0x105   :  { %581 = vst [vmem:[#allocation2 + $0x1e0] sm:$0xff] %v517_v36 }
 0x106   :  { %582 = vst [vmem:[#allocation2 + $0x1e8] sm:$0xff] %v518_v37  ;;  %v229_v38 = vpop.f32.mrf.mxu0  ;;  %v342_v39 = vpop.f32.mrf.mxu1 }
 0x107   :  { %vm423_vm14 = vcmp.le.f32.partialorder %v229_v38, 0.01  ;;  %vm424_vm15 = vcmp.le.f32.partialorder %v342_v39, 0.01 }
 0x108   :  { %v487_v40 = vsel %vm423_vm14, 0.0, %v229_v38  ;;  %v488_v41 = vsel %vm424_vm15, 0.0, %v342_v39 }
 0x109   :  { %551 = vst [vmem:[#allocation2 + $0xf0] sm:$0xff] %v487_v40 }
 0x10a   :  { %552 = vst [vmem:[#allocation2 + $0xf8] sm:$0xff] %v488_v41  ;;  %v277_v42 = vpop.f32.mrf.mxu2  ;;  %v390_v43 = vpop.f32.mrf.mxu3 }
 0x10b   :  { %vm455_vm0 = vcmp.le.f32.partialorder %v277_v42, 0.01  ;;  %vm456_vm1 = vcmp.le.f32.partialorder %v390_v43, 0.01 }
 0x10c   :  { %v519_v44 = vsel %vm455_vm0, 0.0, %v277_v42  ;;  %v520_v45 = vsel %vm456_vm1, 0.0, %v390_v43 }
 0x10d   :  { %583 = vst [vmem:[#allocation2 + $0x1f0] sm:$0xff] %v519_v44 }
 0x10e   :  { %584 = vst [vmem:[#allocation2 + $0x1f8] sm:$0xff] %v520_v45 }
 0x10f   :  { %597 = dma.vmem_to_hbm [thread:$0]  %s590_s14, 8192, %s592_s17, [#allocation3], %s715_s18, %s715_s18, %s716_s19  }
 0x110   :  { %712 = dma.done.wait [#allocation3], 8192  }
 0x111   :  { %713 = vsyncadd [#allocation3], 4294959104 }
 0x112   :  { %602 = vsyncpa [#allocation3], 1 }

</bundles_post_ra>
